<compile_context>
chip_gen: v6e
topology: v6e:2x2x1
jax: 0.10.0
libtpu: 0.0.40
codegen_flags: <defaults>
</compile_context>

<pallas_src>
import functools
import numpy as np

import jax
import jax.numpy as jnp
from jax.experimental import pallas as pl
from jax.experimental.pallas import tpu as pltpu


def _make_divisible(v, divisor, min_value=None):
    if min_value is None:
        min_value = divisor
    new_v = max(min_value, int(v + divisor / 2) // divisor * divisor)
    if new_v < 0.9 * v:
        new_v += divisor
    return new_v


# ---------------------------------------------------------------------------
# Fused SqueezeExcite kernel: one grid step per batch element
# ---------------------------------------------------------------------------
def _se_kernel(x_ref, wr_ref, br_ref, we_ref, be_ref, o_ref, *, inv_hw):
    # x_ref : (1, C, HW)  activations, HW on lanes (lane-dense)
    # wr_ref: (R, C)      conv_reduce weight     br_ref: (R, 1) bias
    # we_ref: (C, R)      conv_expand weight     be_ref: (C, 1) bias
    xb = x_ref[0]                                                # (C, HW)

    # AdaptiveAvgPool2d(1): mean over the spatial (lane) axis -> (C, 1).
    pooled = jnp.sum(xb, axis=1, keepdims=True) * inv_hw

    # conv_reduce (1x1, bias) + ReLU6.
    z = jnp.dot(wr_ref[...], pooled,
                preferred_element_type=jnp.float32) + br_ref[...]   # (R, 1)
    z = jnp.clip(z, 0.0, 6.0)

    # conv_expand (1x1, bias) + hard_sigmoid gate: relu6(g + 3) / 6.
    g = jnp.dot(we_ref[...], z,
                preferred_element_type=jnp.float32) + be_ref[...]   # (C, 1)
    gate = jnp.clip(g + 3.0, 0.0, 6.0) * (1.0 / 6.0)

    # Gate the activations (per-channel gate lane-broadcast over HW).
    o_ref[0] = (xb * gate).astype(o_ref.dtype)


def squeeze_excite_forward(x_nchw, p):
    """SqueezeExcite forward.  x_nchw: (N, C, H, W) float32 (PyTorch layout)."""
    n, c, h, w = x_nchw.shape
    hw = h * w
    r = p["w_reduce"].shape[0]

    # NCHW -> (N, C, HW): spatial axis lands on lanes with zero data movement.
    x = x_nchw.reshape(n, c, hw)

    kern = functools.partial(_se_kernel, inv_hw=1.0 / float(hw))

    flops_per_step = 2 * (c * r) * 2 + 2 * c * hw          # 2 tiny GEMVs + gate
    bytes_per_step = (2 * c * hw + 2 * c * r + r + c) * 4

    out = pl.pallas_call(
        kern,
        out_shape=jax.ShapeDtypeStruct((n, c, hw), jnp.float32),
        grid=(n,),
        in_specs=[
            pl.BlockSpec((1, c, hw), lambda i: (i, 0, 0)),
            pl.BlockSpec((r, c), lambda i: (0, 0)),   # constant index: loaded once
            pl.BlockSpec((r, 1), lambda i: (0, 0)),
            pl.BlockSpec((c, r), lambda i: (0, 0)),
            pl.BlockSpec((c, 1), lambda i: (0, 0)),
        ],
        out_specs=pl.BlockSpec((1, c, hw), lambda i: (i, 0, 0)),
        compiler_params=pltpu.CompilerParams(
            dimension_semantics=("parallel",)),
        cost_estimate=pl.CostEstimate(
            flops=n * flops_per_step,
            transcendentals=0,
            bytes_accessed=n * bytes_per_step),
    )(x, p["w_reduce"], p["b_reduce"].reshape(r, 1),
      p["w_expand"], p["b_expand"].reshape(c, 1))

    return out.reshape(n, c, h, w)


# ---------------------------------------------------------------------------
# Parameter construction (mirrors SqueezeExcite.__init__ shapes)
# ---------------------------------------------------------------------------
def init_se_params(key, in_chs, se_ratio=0.25, reduced_base_chs=None, divisor=4):
    reduced_chs = _make_divisible((reduced_base_chs or in_chs) * se_ratio,
                                  divisor)
    k1, k2, k3, k4 = jax.random.split(key, 4)
    # conv_reduce: Conv2d(in_chs, reduced_chs, 1, bias=True) -> weight (R, C)
    w_reduce = 0.2 * jax.random.normal(k1, (reduced_chs, in_chs), jnp.float32)
    b_reduce = 0.1 * jax.random.normal(k2, (reduced_chs,), jnp.float32)
    # conv_expand: Conv2d(reduced_chs, in_chs, 1, bias=True) -> weight (C, R)
    w_expand = 0.2 * jax.random.normal(k3, (in_chs, reduced_chs), jnp.float32)
    b_expand = 0.1 * jax.random.normal(k4, (in_chs,), jnp.float32)
    return dict(w_reduce=w_reduce, b_reduce=b_reduce,
                w_expand=w_expand, b_expand=b_expand,
                reduced_chs=reduced_chs)


# ---------------------------------------------------------------------------
# Plain-JAX reference (for correctness check only)
# ---------------------------------------------------------------------------
def se_ref(x_nchw, p):
    pooled = jnp.mean(x_nchw, axis=(2, 3))                       # (N, C)
    z = pooled @ p["w_reduce"].T + p["b_reduce"]                 # (N, R)
    z = jnp.clip(z, 0.0, 6.0)                                    # ReLU6
    g = z @ p["w_expand"].T + p["b_expand"]                      # (N, C)
    gate = jnp.clip(g + 3.0, 0.0, 6.0) / 6.0                     # hard_sigmoid
    return x_nchw * gate[:, :, None, None]


if __name__ == "__main__":
    # SqueezeExcite(in_chs=32, se_ratio=0.25) -> reduced_chs = 8
    N, C, H, W = 2, 32, 16, 16

    key = jax.random.PRNGKey(0)
    kx, kp = jax.random.split(key)
    x = jax.random.normal(kx, (N, C, H, W), jnp.float32)
    params = init_se_params(kp, C)

    out = jax.block_until_ready(squeeze_excite_forward(x, params))
    ref = jax.block_until_ready(se_ref(x, params))

    assert out.shape == (N, C, H, W), out.shape
    np.testing.assert_allclose(np.asarray(out), np.asarray(ref),
                               rtol=1e-4, atol=1e-4)
    print("KERNEL_OK")
</pallas_src>

<mosaic_0001>
module attributes {stable_mosaic.version = 11 : i64} {
  func.func @_se_kernel(%arg0: i32, %arg1: memref<1x32x256xf32, #tpu.memory_space<vmem>>, %arg2: memref<8x32xf32, #tpu.memory_space<vmem>>, %arg3: memref<8x1xf32, #tpu.memory_space<vmem>>, %arg4: memref<32x8xf32, #tpu.memory_space<vmem>>, %arg5: memref<32x1xf32, #tpu.memory_space<vmem>>, %arg6: memref<1x32x256xf32, #tpu.memory_space<vmem>>) attributes {dimension_semantics = [#tpu.dimension_semantics<parallel>], iteration_bounds = array<i64: 2>, scalar_prefetch = 0 : i64, scratch_operands = 0 : i64, tpu.core_type = #tpu.core_type<tc>, window_params = [{transform_indices = @transform_0, window_bounds = array<i64: 1, 32, 256>}, {pipeline_mode = #tpu.pipeline_mode<synchronous>, transform_indices = @transform_1, window_bounds = array<i64: 8, 32>}, {pipeline_mode = #tpu.pipeline_mode<synchronous>, transform_indices = @transform_2, window_bounds = array<i64: 8, 1>}, {pipeline_mode = #tpu.pipeline_mode<synchronous>, transform_indices = @transform_3, window_bounds = array<i64: 32, 8>}, {pipeline_mode = #tpu.pipeline_mode<synchronous>, transform_indices = @transform_4, window_bounds = array<i64: 32, 1>}, {transform_indices = @transform_5, window_bounds = array<i64: 1, 32, 256>}]} {
    %c0 = arith.constant 0 : index
    %c0_0 = arith.constant 0 : index
    %c0_1 = arith.constant 0 : index
    %0 = vector.load %arg1[%c0, %c0_0, %c0_1] : memref<1x32x256xf32, #tpu.memory_space<vmem>>, vector<1x32x256xf32>
    %1 = vector.shape_cast %0 : vector<1x32x256xf32> to vector<32x256xf32>
    %cst = arith.constant dense<0.000000e+00> : vector<32xf32>
    %2 = vector.multi_reduction <add>, %1, %cst [1] : vector<32x256xf32> to vector<32xf32>
    %3 = vector.shape_cast %2 : vector<32xf32> to vector<32x1xf32>
    %cst_2 = arith.constant 3.906250e-03 : f32
    %4 = vector.broadcast %cst_2 : f32 to vector<32x1xf32>
    %5 = arith.mulf %3, %4 : vector<32x1xf32>
    %c0_3 = arith.constant 0 : index
    %c0_4 = arith.constant 0 : index
    %6 = vector.load %arg2[%c0_3, %c0_4] : memref<8x32xf32, #tpu.memory_space<vmem>>, vector<8x32xf32>
    %cst_5 = arith.constant dense<0.000000e+00> : vector<8x1xf32>
    %7 = tpu.matmul %6, %5, %cst_5 {dimension_numbers = #tpu.dot_dimension_numbers<[1], [0], [0], [1], [0, 0, 1, 1], [], []>} : vector<8x32xf32>, vector<32x1xf32>, vector<8x1xf32> -> vector<8x1xf32>
    %c0_6 = arith.constant 0 : index
    %c0_7 = arith.constant 0 : index
    %8 = vector.load %arg3[%c0_6, %c0_7] : memref<8x1xf32, #tpu.memory_space<vmem>>, vector<8x1xf32>
    %9 = arith.addf %7, %8 : vector<8x1xf32>
    %cst_8 = arith.constant 0.000000e+00 : f32
    %cst_9 = arith.constant 6.000000e+00 : f32
    %10 = vector.broadcast %cst_8 : f32 to vector<8x1xf32>
    %11 = arith.maximumf %10, %9 : vector<8x1xf32>
    %12 = vector.broadcast %cst_9 : f32 to vector<8x1xf32>
    %13 = arith.minimumf %12, %11 : vector<8x1xf32>
    %c0_10 = arith.constant 0 : index
    %c0_11 = arith.constant 0 : index
    %14 = vector.load %arg4[%c0_10, %c0_11] : memref<32x8xf32, #tpu.memory_space<vmem>>, vector<32x8xf32>
    %cst_12 = arith.constant dense<0.000000e+00> : vector<32x1xf32>
    %15 = tpu.matmul %14, %13, %cst_12 {dimension_numbers = #tpu.dot_dimension_numbers<[1], [0], [0], [1], [0, 0, 1, 1], [], []>} : vector<32x8xf32>, vector<8x1xf32>, vector<32x1xf32> -> vector<32x1xf32>
    %c0_13 = arith.constant 0 : index
    %c0_14 = arith.constant 0 : index
    %16 = vector.load %arg5[%c0_13, %c0_14] : memref<32x1xf32, #tpu.memory_space<vmem>>, vector<32x1xf32>
    %17 = arith.addf %15, %16 : vector<32x1xf32>
    %cst_15 = arith.constant 3.000000e+00 : f32
    %18 = vector.broadcast %cst_15 : f32 to vector<32x1xf32>
    %19 = arith.addf %17, %18 : vector<32x1xf32>
    %cst_16 = arith.constant 0.000000e+00 : f32
    %cst_17 = arith.constant 6.000000e+00 : f32
    %20 = vector.broadcast %cst_16 : f32 to vector<32x1xf32>
    %21 = arith.maximumf %20, %19 : vector<32x1xf32>
    %22 = vector.broadcast %cst_17 : f32 to vector<32x1xf32>
    %23 = arith.minimumf %22, %21 : vector<32x1xf32>
    %cst_18 = arith.constant 0.166666672 : f32
    %24 = vector.broadcast %cst_18 : f32 to vector<32x1xf32>
    %25 = arith.mulf %23, %24 : vector<32x1xf32>
    %26 = vector.broadcast %25 : vector<32x1xf32> to vector<32x256xf32>
    %27 = arith.mulf %1, %26 : vector<32x256xf32>
    %c0_19 = arith.constant 0 : index
    %c0_20 = arith.constant 0 : index
    %c0_21 = arith.constant 0 : index
    %28 = vector.load %arg6[%c0_19, %c0_20, %c0_21] : memref<1x32x256xf32, #tpu.memory_space<vmem>>, vector<1x32x256xf32>
    %29 = vector.shape_cast %28 : vector<1x32x256xf32> to vector<32x256xf32>
    %30 = vector.shape_cast %27 : vector<32x256xf32> to vector<1x32x256xf32>
    tpu.vector_store %arg6[%c0_19, %c0_20, %c0_21], %30 {strides = array<i32>} : memref<1x32x256xf32, #tpu.memory_space<vmem>>, vector<1x32x256xf32>,
    return
  }
  func.func @transform_0(%arg0: i32) -> (i32, i32, i32) {
    %c0_i32 = arith.constant 0 : i32
    %c0_i32_0 = arith.constant 0 : i32
    %c0_i32_1 = arith.constant 0 : i32
    return %arg0, %c0_i32, %c0_i32_0 : i32, i32, i32
  }
  func.func @transform_1(%arg0: i32) -> (i32, i32) {
    %c0_i32 = arith.constant 0 : i32
    %c0_i32_0 = arith.constant 0 : i32
    %c0_i32_1 = arith.constant 0 : i32
    return %c0_i32, %c0_i32_0 : i32, i32
  }
  func.func @transform_2(%arg0: i32) -> (i32, i32) {
    %c0_i32 = arith.constant 0 : i32
    %c0_i32_0 = arith.constant 0 : i32
    %c0_i32_1 = arith.constant 0 : i32
    return %c0_i32, %c0_i32_0 : i32, i32
  }
  func.func @transform_3(%arg0: i32) -> (i32, i32) {
    %c0_i32 = arith.constant 0 : i32
    %c0_i32_0 = arith.constant 0 : i32
    %c0_i32_1 = arith.constant 0 : i32
    return %c0_i32, %c0_i32_0 : i32, i32
  }
  func.func @transform_4(%arg0: i32) -> (i32, i32) {
    %c0_i32 = arith.constant 0 : i32
    %c0_i32_0 = arith.constant 0 : i32
    %c0_i32_1 = arith.constant 0 : i32
    return %c0_i32, %c0_i32_0 : i32, i32
  }
  func.func @transform_5(%arg0: i32) -> (i32, i32, i32) {
    %c0_i32 = arith.constant 0 : i32
    %c0_i32_0 = arith.constant 0 : i32
    %c0_i32_1 = arith.constant 0 : i32
    return %arg0, %c0_i32, %c0_i32_0 : i32, i32, i32
  }
}

</mosaic_0001>

<bundles_post_ra>
// kernel: tpu_custom_call.1
= control target key start
LH: loop header
LB: loop body
LE: loop exit
PB: predicated region body
PF: predicated region fallthrough
CT: control target
= control target key end

     0   :  { %10 = vsyncpa [#allocation3], 0  ;;  %s1048_s0 = inlined_call_operand.hbm [shape: f32[2,32,256], index: 0, kind: input, shape index: {}]   ;;  %s1049_s1 = inlined_call_operand.vmem [shape: f32[8,32], index: 1, kind: input, shape index: {}]   ;;  %s1050_s2 = inlined_call_operand.vmem [shape: f32[8,1], index: 2, kind: input, shape index: {}]   ;;  %s1051_s3 = inlined_call_operand.vmem [shape: f32[32,8], index: 3, kind: input, shape index: {}]   ;;  %s1052_s4 = inlined_call_operand.vmem [shape: f32[32,1], index: 4, kind: input, shape index: {}]   ;;  %s1053_s5 = inlined_call_operand.hbm [shape: f32[2,32,256], index: 5, kind: output, shape index: {}]  }
   0x1   :  { %12 = vsyncpa [#allocation3 + $0x1], 0 }
   0x2   :  { %13 = vsyncpa [#allocation4], 0 }
   0x3   :  { %15 = vsyncpa [#allocation4 + $0x1], 0  ;;  %s828_s18 = smov 0   ;;  %s830_s19 = smov 0  }
   0x4   :  { %s832_s20 = smov 0   ;;  %s834_s21 = smov 0  }
   0x5 LB: > { %s849_s22 = sadd.s32 4294967295, %s787_s21   ;;  %s590_s23 = sadd.s32 4294967294, %s787_s21   ;;  %s787_s21 = sphi %s834_s21, %s1068_s21   ;;  %s783_s20 = sphi %s832_s20, %s1067_s20   ;;  %s779_s19 = sphi %s830_s19, %s1066_s19   ;;  %s775_s18 = sphi %s828_s18, %s1065_s18  }
   0x6   : > { %s853_s24 = sadd.s32 1, %s787_s21   ;;  %s28_s25 = sadd.s32 1, %s783_s20 }
   0x7   : > { %s25_s26 = ssub.s32 %s787_s21, %s853_s24  ;;  %p35_p0 = scmp.ne.s32.totalorder %s783_s20, %s779_s19 }
   0x8   : > { %p26_p1 = scmp.eq.s32.totalorder %s25_s26, 0  ;;  %p36_p2 = scmp.eq.s32.totalorder %s787_s21, 0 }
   0x9   : > { %p41_p3 = scmp.ne.s32.totalorder %s779_s19, %s775_s18  ;;  %p42_p4 = scmp.eq.s32.totalorder %s849_s22, 0 }
   0xa   : > { %s865_s27 = scalar_select %p26_p1, %s783_s20, %s28_s25  }
   0xb   : > { %p867_p5 = por %p36_p2, %p35_p0  ;;  %p871_p6 = por %p42_p4, %p41_p3 }
   0xc   : > { %p149_p7 = scmp.eq.s32.totalorder %s849_s22, 1  ;;  %p155_p8 = scmp.eq.s32.totalorder %s590_s23, 1 }
   0xd   : > { %s1057_s29 = scalar_select %p871_p6, 1, 0 }
   0xe   : > { %p652_p10 = scmp.lt.s32.totalorder %s787_s21, 2  ;;  %p878_p11 = por %p149_p7, %p35_p0 }
   0xf   : > { %p882_p12 = por %p155_p8, %p41_p3  ;;  %s187_s7 = sand.u32 1, %s783_s20  }
  0x10   : > { %s1058_s30 = scalar_select %p878_p11, 1, 0 }
  0x11   : > { %s1059_s6 = scalar_select %p882_p12, 1, 0 }
  0x12   : > { %s609_s8 = sshll.u32 %s787_s21, 10  ;;  %s593_s9 = sshll.u32 %s187_s7, 6 }
  0x13   : > { %s891_s12 = scalar_lea.hbm %s1048_s0, %s609_s8  ;;  %s191_s13 = scalar_lea.vmem [#allocation2], %s593_s9 }
  0x14   : > { %s198_s14 = sshll.u32 %s191_s13, 4  ;;  %p895_p13 = pnand %p652_p10, %p867_p5  ;;  %s899_s14 = int_to_ptr.vmem [resolvable:$true] %s198_s14 }
  0x15   : > { %s901_s16 = scalar_lea.sflag [#allocation3], %s187_s7  ;;  %s695_s17 = scalar_lea.hbm %s891_s12, 1024 }
  0x16   : > { %p696_p0 = scmp.ne.s32.totalorder %s891_s12, %s695_s17  ;;  %p697_p1 = pneg %p895_p13 }
  0x17   : > { %s700_s26 = scalar_lea.hbm %s1048_s0, 2048  ;;  %p701_p4 = scmp.lt.s32.totalorder %s891_s12, %s1048_s0 }
  0x18   : > { %p698_p2 = pnand %p697_p1, %p696_p0  ;;  %p702_p5 = scmp.lt.s32.totalorder %s700_s26, %s695_s17 }
  0x1a   : > { %p699_p3 = pneg %p698_p2  ;;  %p703_p7 = por %p702_p5, %p701_p4 }
  0x1c   : > { %p704_p8 = pnand %p703_p7, %p699_p3 }
  0x1e   : > { %707 = shalt.err (!%p704_p8)
}
  0x1f   : > { %s708_s7 = scalar_lea.vmem %s899_s14, 1024  ;;  %s789_s9 = smov [#allocation2]  }
  0x20   : > { %p709_p10 = scmp.ne.s32.totalorder %s899_s14, %s708_s7  ;;  %s713_s10 = sshll.u32 %s789_s9, 4  ;;  %s714_s10 = int_to_ptr.vmem [resolvable:$false] %s713_s10 }
  0x21   : > { %s715_s11 = scalar_lea.vmem %s714_s10, 2048  ;;  %p716_p2 = scmp.lt.s32.totalorder %s899_s14, %s714_s10 }
  0x22   : > { %p711_p9 = pnand %p709_p10, %p697_p1  ;;  %p717_p12 = scmp.lt.s32.totalorder %s715_s11, %s708_s7 }
  0x24   : > { %p712_p0 = pneg %p711_p9  ;;  %p718_p11 = por %p717_p12, %p716_p2 }
  0x26   : > { %p719_p6 = pnand %p718_p11, %p712_p0 }
  0x28   : > { %722 = shalt.err (!%p719_p6)
}
  0x29   : > { %s790_s13 = smov 256   ;;  %s791_s17 = smov 16  }
  0x2a   : > { %647 = dma.hbm_to_vmem [thread:$0]  (!%p895_p13), %s891_s12, 1024, %s899_s14, %s901_s16, %s790_s13, %s790_s13, %s791_s17  }
  0x2b   : > { %p596_p9 = scmp.ge.s32.totalorder %s787_s21, 1  ;;  %p206_p1 = scmp.lt.s32.totalorder %s787_s21, 3 }
  0x2d   : > { %p207_p3 = pnand %p596_p9, %p206_p1 }
  0x2e   : > { %s925_s23 = sand.u32 (!%p207_p3), 1, %s779_s19   ;;  %p1061_p6 = scmp.ne.s32.totalorder (!%p207_p3), %s1057_s29, 0 }
  0x2f   : > { %210 = sbr.rel (%p207_p3) target bundleno = 759 (0x2f7), region = 40  ;;  %s597_s25 = sshll.u32 (!%p207_p3), %s925_s23, 6 }
  0x30   : > { %s213_s26 = scalar_lea.sflag (!%p207_p3), [#allocation3], %s925_s23  ;;  %s216_s28 = scalar_lea.vmem (!%p207_p3), [#allocation2], %s597_s25 }
  0x34   : > { %766 = dma.done.wait (%p1061_p6), %s213_s26, 1024  }
  0x35   : > { %768 = vsyncadd (%p1061_p6), %s213_s26, 4294966272  ;;  %v935_v0 = vld [vmem:[%s216_s28 + $0x30] sm:$0xff]  ;;  %v937_v1 = vld [vmem:[%s216_s28 + $0x38] sm:$0xff]  ;;  %v792_v12 = vmov 0.0   ;;  %vm793_vm0 = vmmov 0   ;;  %vm269_vm1 = vcmask 261120  }
  0x36   : > { %v939_v2 = vld [vmem:[%s216_s28 + $0x20] sm:$0xff]  ;;  %v260_v3 = vadd.f32 %v937_v1, %v935_v0  ;;  %v943_v4 = vld [vmem:[%s216_s28 + $0x28] sm:$0xff]  ;;  %v945_v5 = vld [vmem:[%s216_s28 + $0x10] sm:$0xff]  ;;  %621 = vmatprep.subr.mxu0 %v792_v12  ;;  %629 = vmatprep.mubr.msk.f32.mxu0 %vm793_vm0, %v792_v12  ;;  %vm353_vm2 = vcmask 64512   ;;  %v794_v32 = vmov 0   ;;  %s242_s7 = scalar_lea.vmem [#allocation5], %s597_s25 }
  0x37   : > { %v947_v6 = vld [vmem:[%s216_s28 + $0x18] sm:$0xff]  ;;  %v951_v8 = vld [vmem:[%s216_s28] sm:$0xff]  ;;  %v953_v9 = vld [vmem:[%s216_s28 + $0x8] sm:$0xff]  ;;  %v257_v10 = vadd.f32 %v943_v4, %v939_v2  ;;  %694 = vset.pattern.permute.xlu1 %v794_v32  ;;  %693 = vset.pattern.permute.xlu0 %v794_v32  ;;  %s517_s9 = sshll.u32 %s242_s7, 4  ;;  %s610_s10 = sshll.u32 %s849_s22, 10  ;;  %s998_s9 = int_to_ptr.vmem [resolvable:$true] %s517_s9 }
  0x38   : > { %v254_v7 = vadd.f32 %v947_v6, %v945_v5  ;;  %261 = vadd.xlane.f32.xlu0 %v260_v3  ;;  %v251_v11 = vadd.f32 %v953_v9, %v951_v8  ;;  %v267_v21 = vld [vmem:[%s1049_s1] sm:$0xff]  ;;  %v346_v29 = vld [vmem:[%s1051_s3 + $0x8] sm:$0xff]  ;;  %v347_v30 = vld [vmem:[%s1051_s3 + $0x10] sm:$0xff]  ;;  %s1003_s13 = scalar_lea.hbm %s1053_s5, %s610_s10  ;;  %s504_s22 = scalar_lea.sflag [#allocation4], %s925_s23 }
  0x39   : > { %v345_v22 = vld [vmem:[%s1051_s3] sm:$0xff]  ;;  %v348_v31 = vld [vmem:[%s1051_s3 + $0x18] sm:$0xff]  ;;  %v350_v33 = vld [vmem:[%s1052_s4 + $0x8] sm:$0xff]  ;;  %s723_s17 = scalar_lea.vmem %s998_s9, 1024  ;;  %p1062_p12 = scmp.ne.s32.totalorder %s1058_s30, 0 }
  0x3a   : > { %255 = vadd.xlane.f32.xlu1 %v254_v7  ;;  %634 = vmatprep.mubr.msk.f32.mxu1 %vm353_vm2, %v345_v22  ;;  %v268_v23 = vld [vmem:[%s1050_s2] sm:$0xff]  ;;  %v352_v38 = vld [vmem:[%s1052_s4 + $0x18] sm:$0xff]  ;;  %v351_v42 = vld [vmem:[%s1052_s4 + $0x10] sm:$0xff]  ;;  %p724_p11 = scmp.ne.s32.totalorder %s998_s9, %s723_s17  ;;  %s795_s26 = smov [#allocation5]  }
  0x3b   : > { %v349_v35 = vld [vmem:[%s1052_s4] sm:$0xff]  ;;  %s727_s28 = sshll.u32 %s795_s26, 4  ;;  %s728_s28 = int_to_ptr.vmem [resolvable:$false] %s727_s28 }
  0x3c   : > { %258 = vadd.xlane.f32.xlu0 %v257_v10  ;;  %p725_p13 = pnand %p724_p11, %p1062_p12  ;;  %s729_s29 = scalar_lea.vmem %s728_s28, 2048 }
  0x3d   : > { %p730_p5 = scmp.lt.s32.totalorder %s998_s9, %s728_s28  ;;  %p731_p7 = scmp.lt.s32.totalorder %s729_s29, %s723_s17 }
  0x3e   : > { %252 = vadd.xlane.f32.xlu1 %v251_v11  ;;  %p726_p4 = pneg %p725_p13 }
  0x3f   : > { %p732_p8 = por %p731_p7, %p730_p5 }
  0x41   : > { %p733_p10 = pnand %p732_p8, %p726_p4 }
  0xc1   : > { %v262_v13 = vpop.xlane.xlu0 %261 }
  0xc2   : > { %v266_v14 = vmul.f32 0.00390625, %v262_v13 }
  0xc3   : > { %v256_v15 = vpop.xlane.xlu1 %255 }
  0xc4   : > { %622 = vmatpush3.msra.mxu0 %v266_v14  ;;  %v264_v19 = vmul.f32 0.00390625, %v256_v15 }
  0xc5   : > { %v259_v16 = vpop.xlane.xlu0 %258  ;;  %623 = vmatprep.subr.mxu0 %v792_v12 }
  0xc6   : > { %v265_v17 = vmul.f32 0.00390625, %v259_v16 }
  0xc7   : > { %v253_v18 = vpop.xlane.xlu1 %252 }
  0xc8   : > { %624 = vmatpush3.msra.mxu0 %v265_v17  ;;  %v263_v20 = vmul.f32 0.00390625, %v253_v18 }
  0xc9   : > { %625 = vmatprep.subr.mxu0 %v792_v12 }
  0xca   : > { %626 = vmatpush3.msra.mxu0 %v264_v19 }
  0xcb   : > { %627 = vmatprep.subr.mxu0 %v792_v12 }
  0xcc   : > { %628 = vmatpush3.msra.mxu0 %v263_v20 }
  0xcd   : > { %630 = vmatmul.mubr.msk.f32.vlgmr.msra.gmra.mxu0 %vm269_vm1, %v267_v21 }
 0x18d   : > { %v339_v24 = vpop.f32.mrf.mxu0 }
 0x18e   : > { %v340_v25 = vadd.f32 %v339_v24, %v268_v23 }
 0x18f   : > { %v631_v26 = vpop.f32.mrf.mxu0 }
 0x190   : > { %v343_v27 = vmax.f32 %v340_v25, 0.0 }
 0x192   : > { %v344_v28 = vmin.f32 %v343_v27, 6.0 }
 0x194   : > { %632 = vmatprep.subr.mxu1 %v344_v28 }
 0x195   : > { %633 = vmatpush3.msra.mxu1 %v344_v28 }
 0x196   : > { %635 = vmatmul.mubr.msk.f32.vlgmr.msra.gmra.mxu1 %vm353_vm2, %v346_v29 }
 0x197   : > { %637 = vmatprep.mubr.msk.f32.mxu1 %vm353_vm2, %v347_v30 }
 0x19a   : > { %638 = vmatmul.mubr.msk.f32.gmra.mxu1 %vm353_vm2, %v348_v31 }
 0x256   : > { %v636_v34 = vpop.f32.mrf.mxu1 }
 0x257   : > { %v438_v36 = vadd.f32 %v636_v34, %v350_v33 }
 0x258   : > { %v432_v37 = vpop.f32.mrf.mxu1 }
 0x259   : > { %v452_v39 = vadd.f32 3.0, %v438_v36  ;;  %v433_v40 = vadd.f32 %v432_v37, %v349_v35 }
 0x25a   : > { %v639_v41 = vpop.f32.mrf.mxu1 }
 0x25b   : > { %v456_v43 = vmax.f32 %v452_v39, 0.0  ;;  %v451_v44 = vadd.f32 3.0, %v433_v40  ;;  %v448_v45 = vadd.f32 %v639_v41, %v352_v38 }
 0x25c   : > { %v442_v46 = vpop.f32.mrf.mxu1 }
 0x25d   : > { %v460_v47 = vmin.f32 %v456_v43, 6.0  ;;  %v455_v48 = vmax.f32 %v451_v44, 0.0  ;;  %v454_v49 = vadd.f32 3.0, %v448_v45  ;;  %v443_v50 = vadd.f32 %v442_v46, %v351_v42 }
 0x25f   : > { %v464_v51 = vmul.f32 0.16666667, %v460_v47  ;;  %v459_v52 = vmin.f32 %v455_v48, 6.0  ;;  %v453_v53 = vadd.f32 3.0, %v443_v50  ;;  %v458_v55 = vmax.f32 %v454_v49, 0.0 }
 0x261   : > { %v463_v54 = vmul.f32 0.16666667, %v459_v52  ;;  %v457_v56 = vmax.f32 %v453_v53, 0.0  ;;  %474 = vperm.xlu1 %694, %v464_v51   ;;  %v462_v58 = vmin.f32 %v458_v55, 6.0 }
 0x263   : > { %v461_v57 = vmin.f32 %v457_v56, 6.0  ;;  %469 = vperm.xlu0 %693, %v463_v54   ;;  %v466_v60 = vmul.f32 0.16666667, %v462_v58 }
 0x265   : > { %v465_v59 = vmul.f32 0.16666667, %v461_v57 }
 0x267   : > { %479 = vperm.xlu1 %694, %v465_v59  }
 0x26b   : > { %484 = vperm.xlu1 %694, %v466_v60  }
 0x2dc   : > { %v475_v61 = vpop.permute.xlu1 %474 }
 0x2dd   : > { %v489_v62 = vmul.f32 %v475_v61, %v945_v5  ;;  %v490_v63 = vmul.f32 %v475_v61, %v947_v6 }
 0x2de   : > { %v470_v3 = vpop.permute.xlu0 %469 }
 0x2df   : > { %497 = vst [vmem:[%s242_s7 + $0x10] sm:$0xff] %v489_v62  ;;  %498 = vst [vmem:[%s242_s7 + $0x18] sm:$0xff] %v490_v63  ;;  %v487_v7 = vmul.f32 %v470_v3, %v951_v8  ;;  %v488_v10 = vmul.f32 %v470_v3, %v953_v9 }
 0x2e1   : > { %495 = vst [vmem:[%s242_s7] sm:$0xff] %v487_v7  ;;  %496 = vst [vmem:[%s242_s7 + $0x8] sm:$0xff] %v488_v10 }
 0x2e2   : > { %v480_v11 = vpop.permute.xlu1 %479 }
 0x2e3   : > { %v491_v12 = vmul.f32 %v480_v11, %v939_v2  ;;  %v492_v5 = vmul.f32 %v480_v11, %v943_v4 }
 0x2e5   : > { %499 = vst [vmem:[%s242_s7 + $0x20] sm:$0xff] %v491_v12  ;;  %500 = vst [vmem:[%s242_s7 + $0x28] sm:$0xff] %v492_v5 }
 0x2e6   : > { %v485_v6 = vpop.permute.xlu1 %484 }
 0x2e7   : > { %v493_v8 = vmul.f32 %v485_v6, %v935_v0  ;;  %v494_v2 = vmul.f32 %v485_v6, %v937_v1 }
 0x2e9   : > { %501 = vst [vmem:[%s242_s7 + $0x30] sm:$0xff] %v493_v8  ;;  %502 = vst [vmem:[%s242_s7 + $0x38] sm:$0xff] %v494_v2 }
 0x2ea   : > { %736 = shalt.err (!%p733_p10)
}
 0x2eb   : > { %s737_s12 = scalar_lea.hbm %s1003_s13, 1024  ;;  %s741_s16 = scalar_lea.hbm %s1053_s5, 2048 }
 0x2ec   : > { %p738_p0 = scmp.ne.s32.totalorder %s1003_s13, %s737_s12  ;;  %p742_p1 = scmp.lt.s32.totalorder %s1003_s13, %s1053_s5 }
 0x2ed   : > { %p743_p3 = scmp.lt.s32.totalorder %s741_s16, %s737_s12 }
 0x2ee   : > { %p739_p2 = pnand %p738_p0, %p1062_p12 }
 0x2ef   : > { %p744_p6 = por %p743_p3, %p742_p1 }
 0x2f0   : > { %p740_p9 = pneg %p739_p2 }
 0x2f2   : > { %p745_p11 = pnand %p744_p6, %p740_p9 }
 0x2f4   : > { %748 = shalt.err (!%p745_p11)
}
 0x2f5   : > { %s796_s10 = smov 256   ;;  %s797_s25 = smov 16  }
 0x2f6   : > { %642 = dma.vmem_to_hbm [thread:$0]  (%p1062_p12), %s998_s9, 1024, %s1003_s13, %s504_s22, %s796_s10, %s796_s10, %s797_s25  }
 0x2f7 PF: > { %s532_s11 = sand.u32 1, %s775_s18   ;;  %p1063_p13 = scmp.ne.s32.totalorder %s1059_s6, 0 }
 0x2f8   : > { %p1064_p4 = scmp.ge.s32.totalorder %s787_s21, 2  ;;  %s533_s17 = scalar_lea.sflag [#allocation4], %s532_s11 }
 0x2fa   : > { %p649_p5 = pnand %p1064_p4, %p1063_p13 }
 0x2fc   : > { %p650_p7 = pneg %p649_p5 }
 0x2fe   : > { %770 = dma.done.wait (%p650_p7), %s533_s17, 1024  }
 0x2ff   : > { %772 = vsyncadd (%p650_p7), %s533_s17, 4294966272  ;;  %p18_p8 = scmp.ge.s32.totalorder %s853_s24, 4   ;;  %s1065_s18 = smov %s779_s19 }
 0x300   : > { %s1066_s19 = smov %s783_s20  ;;  %s1067_s20 = smov %s865_s27 }
 0x301   : > { %s1068_s21 = smov %s853_s24  ;;  %20 = sbr.rel (!%p18_p8) target bundleno = 5 (0x5), region = 85 }
 0x306   :  { %538 = vsyncpa [#allocation3], 1 }
 0x307   :  { %540 = vsyncpa [#allocation3 + $0x1], 1 }
 0x308   :  { %541 = vsyncpa [#allocation4], 1 }
 0x309   :  { %543 = vsyncpa [#allocation4 + $0x1], 1 }

</bundles_post_ra>
